<compile_context>
chip_gen: v6e
topology: v6e:2x2x1
jax: 0.10.0
libtpu: 0.0.40
codegen_flags: <defaults>
</compile_context>

<pallas_src>
import math

import jax
import jax.numpy as jnp
from jax.experimental import pallas as pl
from jax.experimental.pallas import tpu as pltpu

N_OPS = 4            # len(primitives)
N_LRS = 5            # len(lrs)
GRAD_DIM = 64
EMB_DIM = 32
TEMPERATURE = 0.1
LANES = 128

# Tiling (f32 bytes per stream per block):
#   elementwise: 2048 x 128 = 1 MiB -> worst case 5 streams x 2 buffers = 10 MiB
#   colsum:      4096 x 128 = 2 MiB -> 2 streams x 2 buffers          =  8 MiB
# Both fit under the raised 32 MiB scoped-VMEM limit on every generation
# (v5e/v6e physical VMEM 128 MiB, v7x physical 64 MiB).
ADV_TILE_ROWS = 2048
COLSUM_TILE_ROWS = 4096
VMEM_LIMIT_BYTES = 32 * 1024 * 1024


# --------------------------------------------------------------------------
# Kernel 1: lane-dense column-sum reduction over grad / last_grad.
# mean(emb @ (grad_w @ W.T + b).T, -1) == emb @ (W @ mean(grad_w, 0) + b), so
# only the column mean of grad_w is needed; grad_w is never materialized.
# Inputs are viewed as (rows, 128); the 64-wide column sum is recovered in the
# wrapper by adding the two 64-lane halves.
# --------------------------------------------------------------------------
def _make_colsum_kernel(n_rows, tile_rows, tiles_per_core, needs_mask):
    def kernel(g_ref, lg_ref, gsum_ref, lgsum_ref):
        c = pl.program_id(0)
        i = pl.program_id(1)

        @pl.when(i == 0)
        def _():
            gsum_ref[...] = jnp.zeros_like(gsum_ref)
            lgsum_ref[...] = jnp.zeros_like(lgsum_ref)

        g = g_ref[...].astype(jnp.float32)
        lg = lg_ref[...].astype(jnp.float32)
        if needs_mask:  # compile-time: only emitted when the grid is ragged
            base = (c * tiles_per_core + i) * tile_rows
            row = jax.lax.broadcasted_iota(jnp.int32, g.shape, 0) + base
            valid = row < n_rows
            g = jnp.where(valid, g, 0.0)
            lg = jnp.where(valid, lg, 0.0)

        gsum_ref[...] += jnp.broadcast_to(jnp.sum(g, axis=0), gsum_ref.shape)
        lgsum_ref[...] += jnp.broadcast_to(jnp.sum(lg, axis=0), lgsum_ref.shape)

    return kernel


def column_sums(g128, lg128):
    rows, lanes = g128.shape                         # lanes == 128
    tile_rows = rows if rows <= COLSUM_TILE_ROWS else COLSUM_TILE_ROWS
    n_tiles = pl.cdiv(rows, tile_rows)
    n_cores = 2 if n_tiles > 1 else 1                # leading "parallel" axis
    tpc = pl.cdiv(n_tiles, n_cores)                  # tiles per core slice
    needs_mask = (n_cores * tpc * tile_rows) != rows

    def in_map(c, i):
        # clamp redundant grid points to a valid block (their rows are masked)
        return (jnp.minimum(c * tpc + i, n_tiles - 1), 0)

    in_spec = pl.BlockSpec((tile_rows, lanes), in_map)
    out_spec = pl.BlockSpec((1, 8, lanes), lambda c, i: (c, 0, 0))
    out_sds = jax.ShapeDtypeStruct((n_cores, 8, lanes), jnp.float32)

    return pl.pallas_call(
        _make_colsum_kernel(rows, tile_rows, tpc, needs_mask),
        out_shape=(out_sds, out_sds),
        grid=(n_cores, tpc),
        in_specs=[in_spec, in_spec],
        out_specs=(out_spec, out_spec),
        compiler_params=pltpu.CompilerParams(
            dimension_semantics=("parallel", "arbitrary"),
            vmem_limit_bytes=VMEM_LIMIT_BYTES),
    )(g128, lg128)


# --------------------------------------------------------------------------
# Kernel 2: adv_forward + perturbation clamp, specialized per attack op.
#   step = (lr * eps) * op_selected(grad, last_grad, last_adv)
#   out  = clamp(x + clamp(delta + step, -eps, eps), 0, 1) - delta - x
# (the selected hard one-hot alpha weight is exactly 1.0)
# --------------------------------------------------------------------------
def _clamp_out(step, d, xx, eps):
    return jnp.clip(xx + jnp.clip(d + step, -eps, eps), 0.0, 1.0) - d - xx


def _make_adv_kernel(step_fn, has_aux):
    if has_aux:
        def kernel(scal_ref, g_ref, aux_ref, d_ref, x_ref, o_ref):
            eps = scal_ref[0]
            c = scal_ref[1]
            g = g_ref[...].astype(jnp.float32)
            a = aux_ref[...].astype(jnp.float32)
            step = c * step_fn(g, a)
            out = _clamp_out(step, d_ref[...].astype(jnp.float32),
                             x_ref[...].astype(jnp.float32), eps)
            o_ref[...] = out.astype(o_ref.dtype)
    else:
        def kernel(scal_ref, g_ref, d_ref, x_ref, o_ref):
            eps = scal_ref[0]
            c = scal_ref[1]
            g = g_ref[...].astype(jnp.float32)
            step = c * step_fn(g, None)
            out = _clamp_out(step, d_ref[...].astype(jnp.float32),
                             x_ref[...].astype(jnp.float32), eps)
            o_ref[...] = out.astype(o_ref.dtype)
    return kernel


# synthetic elementwise attack primitives op(grad, last_grad, last_adv)
_KERNEL_OP0 = _make_adv_kernel(lambda g, _:  jnp.sign(g), False)          # FGSM sign
_KERNEL_OP1 = _make_adv_kernel(lambda g, lg: jnp.sign(g + lg), True)       # smoothed sign
_KERNEL_OP2 = _make_adv_kernel(lambda g, la: 0.9 * la + jnp.sign(g), True)  # momentum
_KERNEL_OP3 = _make_adv_kernel(lambda g, lg: g - lg, True)                 # grad diff


def adv_elementwise(op_idx, scal, g2, lg2, la2, d2, x2):
    rows, lanes = x2.shape
    tile_rows = rows if rows <= ADV_TILE_ROWS else ADV_TILE_ROWS
    grid = (pl.cdiv(rows, tile_rows),)
    spec = pl.BlockSpec((tile_rows, lanes), lambda i, s: (i, 0))
    out_shape = jax.ShapeDtypeStruct((rows, lanes), x2.dtype)
    cparams = pltpu.CompilerParams(dimension_semantics=("parallel",),
                                   vmem_limit_bytes=VMEM_LIMIT_BYTES)

    def call(kernel, s, *tensors):
        return pl.pallas_call(
            kernel,
            out_shape=out_shape,
            grid_spec=pltpu.PrefetchScalarGridSpec(
                num_scalar_prefetch=1,
                grid=grid,
                in_specs=[spec] * len(tensors),
                out_specs=spec),
            compiler_params=cparams,
        )(s, *tensors)

    # Only stream the tensors the selected op actually reads.
    return jax.lax.switch(
        jnp.asarray(op_idx, jnp.int32),
        [lambda s, g, lg, la, d, x: call(_KERNEL_OP0, s, g, d, x),
         lambda s, g, lg, la, d, x: call(_KERNEL_OP1, s, g, lg, d, x),
         lambda s, g, lg, la, d, x: call(_KERNEL_OP2, s, g, la, d, x),
         lambda s, g, lg, la, d, x: call(_KERNEL_OP3, s, g, lg, d, x)],
        scal, g2, lg2, la2, d2, x2)


def _xla_elementwise_tail(op_idx, c, eps, g, lg, la, d, x):
    """Plain-XLA path for the (at most 64-element) non-128-lane tail."""
    g = g.astype(jnp.float32)
    lg = lg.astype(jnp.float32)
    la = la.astype(jnp.float32)
    d = d.astype(jnp.float32)
    xx = x.astype(jnp.float32)
    ops = jnp.stack([jnp.sign(g), jnp.sign(g + lg),
                     0.9 * la + jnp.sign(g), g - lg])
    step = c * ops[op_idx]
    return _clamp_out(step, d, xx, eps)


# --------------------------------------------------------------------------
# Forward
# --------------------------------------------------------------------------
def mixed_adv_forward(p, grad, last_grad, last_adv, delta, x, eps, key):
    shape = x.shape
    total = math.prod(shape)
    assert total % GRAD_DIM == 0, "grad.view(-1, grad_dim) precondition"
    n64 = total // GRAD_DIM
    rows128 = total // LANES
    rem = total - rows128 * LANES            # 0 or GRAD_DIM (=64)

    gflat = grad.reshape(-1)
    lgflat = last_grad.reshape(-1)

    # ---- alpha / lr logits (fused: lane-dense column sums + tiny matvec) ----
    if rows128 > 0:
        gsum, lgsum = column_sums(
            gflat[:rows128 * LANES].reshape(rows128, LANES),
            lgflat[:rows128 * LANES].reshape(rows128, LANES))
        g128 = gsum[:, 0, :].sum(axis=0)
        lg128 = lgsum[:, 0, :].sum(axis=0)
        g64 = g128[:GRAD_DIM] + g128[GRAD_DIM:]
        lg64 = lg128[:GRAD_DIM] + lg128[GRAD_DIM:]
    else:
        g64 = jnp.zeros((GRAD_DIM,), jnp.float32)
        lg64 = jnp.zeros((GRAD_DIM,), jnp.float32)
    if rem:
        g64 = g64 + gflat[rows128 * LANES:].astype(jnp.float32)
        lg64 = lg64 + lgflat[rows128 * LANES:].astype(jnp.float32)

    gw_mean = jnp.concatenate([lg64, g64]) * jnp.float32(1.0 / n64)

    op_logits = p["op_emb"] @ (p["op_w"] @ gw_mean + p["op_b"][0])   # (N_OPS,)
    lr_logits = p["lr_emb"] @ (p["lr_w"] @ gw_mean + p["lr_b"][0])   # (N_LRS,)

    # hard gumbel-softmax (forward value of straight-through is an exact one-hot)
    u = jax.random.uniform(key, (N_OPS,), minval=1e-6, maxval=1.0 - 1e-6)
    gumbel = -jnp.log(-jnp.log(u))
    op_idx = jnp.argmax(op_logits + gumbel).astype(jnp.int32)
    alpha_op = jax.nn.one_hot(op_idx, N_OPS, dtype=jnp.float32)

    alpha_lr = jax.nn.softmax(lr_logits / TEMPERATURE)
    lr = jnp.dot(p["lrs"], alpha_lr)                                 # scalar

    # ---- elementwise hot path (lane-dense bulk + tiny XLA tail) -------------
    eps_f = jnp.asarray(eps, jnp.float32)
    c = lr * eps_f                       # selected one-hot alpha weight == 1.0
    scal = jnp.stack([eps_f, c]).astype(jnp.float32)

    pieces = []
    if rows128 > 0:
        bulk = lambda t: t.reshape(-1)[:rows128 * LANES].reshape(rows128, LANES)
        out_bulk = adv_elementwise(op_idx, scal, bulk(grad), bulk(last_grad),
                                   bulk(last_adv), bulk(delta), bulk(x))
        pieces.append(out_bulk.reshape(-1))
    if rem:
        tail = lambda t: t.reshape(-1)[rows128 * LANES:]
        out_tail = _xla_elementwise_tail(
            op_idx, c, eps_f, tail(grad), tail(last_grad), tail(last_adv),
            tail(delta), tail(x)).astype(x.dtype)
        pieces.append(out_tail)
    out_flat = pieces[0] if len(pieces) == 1 else jnp.concatenate(pieces)

    # NOTE: torch's `for w in alpha_op: if w: out = w*out` multiplies by the
    # selected weight (exactly 1.0 for a hard one-hot), and `out * lr / lr.item()`
    # is a forward identity (gradient-routing trick); both are omitted.
    return out_flat.reshape(shape), alpha_op, alpha_lr, lr, op_logits, lr_logits


# --------------------------------------------------------------------------
# Pure-JAX references (for a light sanity check)
# --------------------------------------------------------------------------
def ref_alpha_logits(grad_w, p):
    h_op = grad_w @ p["op_w"].T + p["op_b"][0]
    h_lr = grad_w @ p["lr_w"].T + p["lr_b"][0]
    op_logits = (p["op_emb"] @ h_op.T).mean(-1)
    lr_logits = (p["lr_emb"] @ h_lr.T).mean(-1)
    return op_logits, lr_logits


def ref_elementwise(grad, lgrad, ladv, delta, x, alpha_op, lr, eps):
    ops = [jnp.sign(grad), jnp.sign(grad + lgrad),
           0.9 * ladv + jnp.sign(grad), grad - lgrad]
    adv = sum(w * o for w, o in zip(alpha_op, ops))
    out = lr * adv * eps
    out = jnp.clip(x + jnp.clip(delta + out, -eps, eps), 0.0, 1.0) - delta - x
    return out * jnp.max(alpha_op)   # == out for a hard one-hot


if __name__ == "__main__":
    key = jax.random.PRNGKey(0)
    ks = jax.random.split(key, 12)

    scale = 0.1
    params = {
        "op_w": scale * jax.random.normal(ks[0], (EMB_DIM, 2 * GRAD_DIM), jnp.float32),
        "op_b": scale * jax.random.normal(ks[1], (1, EMB_DIM), jnp.float32),
        "op_emb": jax.random.normal(ks[2], (N_OPS, EMB_DIM), jnp.float32),
        "lr_w": scale * jax.random.normal(ks[3], (EMB_DIM, 2 * GRAD_DIM), jnp.float32),
        "lr_b": scale * jax.random.normal(ks[4], (1, EMB_DIM), jnp.float32),
        "lr_emb": jax.random.normal(ks[5], (N_LRS, EMB_DIM), jnp.float32),
        "lrs": jnp.array([0.1, 0.5, 1.0, 2.0, 5.0], jnp.float32),
    }

    # small NCHW inputs: batch=2, channels=4, spatial=16x16 -> 2048 elements
    shape = (2, 4, 16, 16)
    eps = 8.0 / 255.0
    grad = 0.1 * jax.random.normal(ks[6], shape, jnp.float32)
    last_grad = 0.1 * jax.random.normal(ks[7], shape, jnp.float32)
    last_adv = jnp.sign(jax.random.normal(ks[8], shape, jnp.float32))
    delta = jax.random.uniform(ks[9], shape, jnp.float32, minval=-eps, maxval=eps)
    x = jax.random.uniform(ks[10], shape, jnp.float32, minval=0.0, maxval=1.0)

    out, alpha_op, alpha_lr, lr, op_logits, lr_logits = mixed_adv_forward(
        params, grad, last_grad, last_adv, delta, x, eps, key=ks[11])
    out = jax.block_until_ready(out)

    # sanity checks against pure-JAX reference (grad_w only built for the ref)
    grad_w = jnp.concatenate(
        [last_grad.reshape(-1, GRAD_DIM), grad.reshape(-1, GRAD_DIM)], axis=-1)
    r_op, r_lr = ref_alpha_logits(grad_w, params)
    assert jnp.allclose(op_logits, r_op, atol=1e-3, rtol=1e-3)
    assert jnp.allclose(lr_logits, r_lr, atol=1e-3, rtol=1e-3)
    r_out = ref_elementwise(grad, last_grad, last_adv, delta, x, alpha_op, lr, eps)
    assert jnp.allclose(out, r_out, atol=1e-5, rtol=1e-5)

    print("KERNEL_OK")
</pallas_src>

<mosaic_0001>
module attributes {stable_mosaic.version = 11 : i64} {
  func.func @kernel(%arg0: i32, %arg1: i32, %arg2: memref<16x128xf32, #tpu.memory_space<vmem>>, %arg3: memref<16x128xf32, #tpu.memory_space<vmem>>, %arg4: memref<1x8x128xf32, #tpu.memory_space<vmem>>, %arg5: memref<1x8x128xf32, #tpu.memory_space<vmem>>) attributes {dimension_semantics = [#tpu.dimension_semantics<parallel>, #tpu.dimension_semantics<arbitrary>], iteration_bounds = array<i64: 1, 1>, scalar_prefetch = 0 : i64, scratch_operands = 0 : i64, tpu.core_type = #tpu.core_type<tc>, window_params = [{transform_indices = @transform_0, window_bounds = array<i64: 16, 128>}, {transform_indices = @transform_1, window_bounds = array<i64: 16, 128>}, {transform_indices = @transform_2, window_bounds = array<i64: 1, 8, 128>}, {transform_indices = @transform_3, window_bounds = array<i64: 1, 8, 128>}]} {
    %c0_i32 = arith.constant 0 : i32
    %0 = arith.cmpi eq, %arg1, %c0_i32 : i32
    %1 = arith.extui %0 : i1 to i32
    %c0_i32_0 = arith.constant 0 : i32
    %2 = arith.cmpi ne, %1, %c0_i32_0 : i32
    scf.if %2 {
      %cst_17 = arith.constant 0.000000e+00 : f32
      %17 = vector.broadcast %cst_17 : f32 to vector<1x8x128xf32>
      %c0_18 = arith.constant 0 : index
      %c0_19 = arith.constant 0 : index
      %c0_20 = arith.constant 0 : index
      %18 = vector.load %arg4[%c0_18, %c0_19, %c0_20] : memref<1x8x128xf32, #tpu.memory_space<vmem>>, vector<1x8x128xf32>
      tpu.vector_store %arg4[%c0_18, %c0_19, %c0_20], %17 {strides = array<i32>} : memref<1x8x128xf32, #tpu.memory_space<vmem>>, vector<1x8x128xf32>,
      %cst_21 = arith.constant 0.000000e+00 : f32
      %19 = vector.broadcast %cst_21 : f32 to vector<1x8x128xf32>
      %c0_22 = arith.constant 0 : index
      %c0_23 = arith.constant 0 : index
      %c0_24 = arith.constant 0 : index
      %20 = vector.load %arg5[%c0_22, %c0_23, %c0_24] : memref<1x8x128xf32, #tpu.memory_space<vmem>>, vector<1x8x128xf32>
      tpu.vector_store %arg5[%c0_22, %c0_23, %c0_24], %19 {strides = array<i32>} : memref<1x8x128xf32, #tpu.memory_space<vmem>>, vector<1x8x128xf32>,
    } else {
    }
    %c0 = arith.constant 0 : index
    %c0_1 = arith.constant 0 : index
    %3 = vector.load %arg2[%c0, %c0_1] : memref<16x128xf32, #tpu.memory_space<vmem>>, vector<16x128xf32>
    %c0_2 = arith.constant 0 : index
    %c0_3 = arith.constant 0 : index
    %4 = vector.load %arg3[%c0_2, %c0_3] : memref<16x128xf32, #tpu.memory_space<vmem>>, vector<16x128xf32>
    %c0_4 = arith.constant 0 : index
    %c0_5 = arith.constant 0 : index
    %c0_6 = arith.constant 0 : index
    %5 = vector.load %arg4[%c0_4, %c0_5, %c0_6] : memref<1x8x128xf32, #tpu.memory_space<vmem>>, vector<1x8x128xf32>
    %cst = arith.constant dense<0.000000e+00> : vector<128xf32>
    %6 = vector.multi_reduction <add>, %3, %cst [0] : vector<16x128xf32> to vector<128xf32>
    %7 = vector.shape_cast %6 : vector<128xf32> to vector<1x1x128xf32>
    %8 = vector.broadcast %7 : vector<1x1x128xf32> to vector<1x8x128xf32>
    %9 = arith.addf %5, %8 : vector<1x8x128xf32>
    %c0_7 = arith.constant 0 : index
    %c0_8 = arith.constant 0 : index
    %c0_9 = arith.constant 0 : index
    %10 = vector.load %arg4[%c0_7, %c0_8, %c0_9] : memref<1x8x128xf32, #tpu.memory_space<vmem>>, vector<1x8x128xf32>
    tpu.vector_store %arg4[%c0_7, %c0_8, %c0_9], %9 {strides = array<i32>} : memref<1x8x128xf32, #tpu.memory_space<vmem>>, vector<1x8x128xf32>,
    %c0_10 = arith.constant 0 : index
    %c0_11 = arith.constant 0 : index
    %c0_12 = arith.constant 0 : index
    %11 = vector.load %arg5[%c0_10, %c0_11, %c0_12] : memref<1x8x128xf32, #tpu.memory_space<vmem>>, vector<1x8x128xf32>
    %cst_13 = arith.constant dense<0.000000e+00> : vector<128xf32>
    %12 = vector.multi_reduction <add>, %4, %cst_13 [0] : vector<16x128xf32> to vector<128xf32>
    %13 = vector.shape_cast %12 : vector<128xf32> to vector<1x1x128xf32>
    %14 = vector.broadcast %13 : vector<1x1x128xf32> to vector<1x8x128xf32>
    %15 = arith.addf %11, %14 : vector<1x8x128xf32>
    %c0_14 = arith.constant 0 : index
    %c0_15 = arith.constant 0 : index
    %c0_16 = arith.constant 0 : index
    %16 = vector.load %arg5[%c0_14, %c0_15, %c0_16] : memref<1x8x128xf32, #tpu.memory_space<vmem>>, vector<1x8x128xf32>
    tpu.vector_store %arg5[%c0_14, %c0_15, %c0_16], %15 {strides = array<i32>} : memref<1x8x128xf32, #tpu.memory_space<vmem>>, vector<1x8x128xf32>,
    return
  }
  func.func @transform_0(%arg0: i32, %arg1: i32) -> (i32, i32) {
    %c1_i32 = arith.constant 1 : i32
    %0 = arith.muli %arg0, %c1_i32 : i32
    %1 = arith.addi %0, %arg1 : i32
    %c0_i32 = arith.constant 0 : i32
    %2 = arith.minsi %1, %c0_i32 : i32
    %c0_i32_0 = arith.constant 0 : i32
    %c0_i32_1 = arith.constant 0 : i32
    return %2, %c0_i32_0 : i32, i32
  }
  func.func @transform_1(%arg0: i32, %arg1: i32) -> (i32, i32) {
    %c1_i32 = arith.constant 1 : i32
    %0 = arith.muli %arg0, %c1_i32 : i32
    %1 = arith.addi %0, %arg1 : i32
    %c0_i32 = arith.constant 0 : i32
    %2 = arith.minsi %1, %c0_i32 : i32
    %c0_i32_0 = arith.constant 0 : i32
    %c0_i32_1 = arith.constant 0 : i32
    return %2, %c0_i32_0 : i32, i32
  }
  func.func @transform_2(%arg0: i32, %arg1: i32) -> (i32, i32, i32) {
    %c0_i32 = arith.constant 0 : i32
    %c0_i32_0 = arith.constant 0 : i32
    %c0_i32_1 = arith.constant 0 : i32
    return %arg0, %c0_i32, %c0_i32_0 : i32, i32, i32
  }
  func.func @transform_3(%arg0: i32, %arg1: i32) -> (i32, i32, i32) {
    %c0_i32 = arith.constant 0 : i32
    %c0_i32_0 = arith.constant 0 : i32
    %c0_i32_1 = arith.constant 0 : i32
    return %arg0, %c0_i32, %c0_i32_0 : i32, i32, i32
  }
}

</mosaic_0001>

<bundles_post_ra>
// kernel: tpu_custom_call.1
= control target key start
LH: loop header
LB: loop body
LE: loop exit
PB: predicated region body
PF: predicated region fallthrough
CT: control target
= control target key end

     0   :  { %9 = vsyncpa [#allocation3], 0  ;;  %s260_s0 = inlined_call_operand.hbm [shape: f32[16,128], index: 0, kind: input, shape index: {}]   ;;  %s261_s1 = inlined_call_operand.hbm [shape: f32[16,128], index: 1, kind: input, shape index: {}]   ;;  %s262_s2 = inlined_call_operand.hbm [shape: f32[1,8,128], index: 2, kind: output, shape index: {0}]   ;;  %s263_s3 = inlined_call_operand.hbm [shape: f32[1,8,128], index: 3, kind: output, shape index: {1}]  }
   0x1   :  { %10 = vsyncpa [#allocation6], 0 }
   0x2   :  { %11 = vsyncpa [#allocation4], 0 }
   0x3   :  { %12 = vsyncpa [#allocation9], 0  ;;  %s222_s12 = smov [#allocation2]  }
   0x4   :  { %s24_s13 = sshll.u32 %s222_s12, 4  ;;  %s25_s13 = int_to_ptr.vmem [resolvable:$true] %s24_s13 }
   0x5   :  { %s142_s14 = scalar_lea.vmem %s25_s13, 256  ;;  %p147_p1 = scmp.lt.s32.totalorder %s25_s13, %s25_s13 }
   0x6   :  { %p143_p0 = scmp.ne.s32.totalorder %s25_s13, %s142_s14  ;;  %p148_p2 = scmp.lt.s32.totalorder %s142_s14, %s142_s14 }
   0x8   :  { %p149_p3 = por %p148_p2, %p147_p1 }
   0xa   :  { %p150_p4 = pnand %p149_p3, %p143_p0 }
   0xc   :  { %153 = shalt.err (!%p150_p4)
}
   0xd   :  { %s223_s15 = smov 128   ;;  %s224_s16 = smov 8  }
   0xe   :  { %30 = dma.hbm_to_vmem [thread:$0]  %s260_s0, 256, %s25_s13, [#allocation3], %s223_s15, %s223_s15, %s224_s16  }
   0xf   :  { %s225_s19 = smov [#allocation5]  }
  0x10   :  { %s42_s20 = sshll.u32 %s225_s19, 4  ;;  %s43_s20 = int_to_ptr.vmem [resolvable:$true] %s42_s20 }
  0x11   :  { %s162_s21 = scalar_lea.vmem %s43_s20, 256  ;;  %p167_p6 = scmp.lt.s32.totalorder %s43_s20, %s43_s20 }
  0x12   :  { %p163_p5 = scmp.ne.s32.totalorder %s43_s20, %s162_s21  ;;  %p168_p7 = scmp.lt.s32.totalorder %s162_s21, %s162_s21 }
  0x14   :  { %p169_p8 = por %p168_p7, %p167_p6 }
  0x16   :  { %p170_p9 = pnand %p169_p8, %p163_p5 }
  0x18   :  { %173 = shalt.err (!%p170_p9)
}
  0x19   :  { %48 = dma.hbm_to_vmem [thread:$0]  %s261_s1, 256, %s43_s20, [#allocation6], %s223_s15, %s223_s15, %s224_s16  }
  0x1a   :  { %214 = dma.done.wait [#allocation3], 256  }
  0x1b   :  { %215 = vsyncadd [#allocation3], 4294967040 }
  0x1c   :  { %216 = dma.done.wait [#allocation6], 256  }
  0x1d   :  { %217 = vsyncadd [#allocation6], 4294967040  ;;  %v69_v0 = vld [vmem:[#allocation2] sm:$0xff]  ;;  %v70_v1 = vld [vmem:[#allocation2 + $0x8] sm:$0xff]  ;;  %s226_s0 = smov [#allocation7]   ;;  %s227_s24 = smov [#allocation8]  }
  0x1e   :  { %v71_v2 = vld [vmem:[#allocation5] sm:$0xff]  ;;  %v74_v3 = vadd.f32 %v70_v1, %v69_v0  ;;  %v72_v4 = vld [vmem:[#allocation5 + $0x8] sm:$0xff]  ;;  %s99_s1 = sshll.u32 %s226_s0, 4  ;;  %s109_s25 = sshll.u32 %s227_s24, 4  ;;  %s100_s1 = int_to_ptr.vmem [resolvable:$true] %s99_s1  ;;  %s110_s25 = int_to_ptr.vmem [resolvable:$true] %s109_s25 }
  0x1f   :  { %v84_v5 = vadd.f32 %v72_v4, %v71_v2  ;;  %s174_s26 = scalar_lea.vmem %s100_s1, 128  ;;  %p179_p11 = scmp.lt.s32.totalorder %s100_s1, %s100_s1 }
  0x20   :  { %v75_v6 = vrot.slane %v74_v3, 4  ;;  %p175_p10 = scmp.ne.s32.totalorder %s100_s1, %s174_s26  ;;  %p180_p12 = scmp.lt.s32.totalorder %s174_s26, %s174_s26 }
  0x21   :  { %v85_v7 = vrot.slane %v84_v5, 4 }
  0x22   :  { %v76_v8 = vadd.f32 %v75_v6, %v74_v3  ;;  %p181_p13 = por %p180_p12, %p179_p11 }
  0x23   :  { %v86_v9 = vadd.f32 %v85_v7, %v84_v5 }
  0x24   :  { %v77_v10 = vrot.slane %v76_v8, 2  ;;  %p182_p0 = pnand %p181_p13, %p175_p10 }
  0x25   :  { %v87_v11 = vrot.slane %v86_v9, 2 }
  0x26   :  { %v78_v12 = vadd.f32 %v77_v10, %v76_v8 }
  0x27   :  { %v88_v13 = vadd.f32 %v87_v11, %v86_v9 }
  0x28   :  { %v79_v14 = vrot.slane %v78_v12, 1 }
  0x29   :  { %v89_v15 = vrot.slane %v88_v13, 1 }
  0x2a   :  { %v80_v16 = vadd.f32 %v79_v14, %v78_v12 }
  0x2b   :  { %v90_v17 = vadd.f32 %v89_v15, %v88_v13 }
  0x2c   :  { %82 = vst [vmem:[#allocation7] sm:$0xff] %v80_v16 }
  0x2d   :  { %92 = vst [vmem:[#allocation8] sm:$0xff] %v90_v17 }
  0x2e   :  { %185 = shalt.err (!%p182_p0)
}
  0x2f   :  { %102 = dma.vmem_to_hbm [thread:$0]  %s100_s1, 128, %s262_s2, [#allocation4]  }
  0x30   :  { %s194_s29 = scalar_lea.vmem %s110_s25, 128  ;;  %p199_p2 = scmp.lt.s32.totalorder %s110_s25, %s110_s25 }
  0x31   :  { %p195_p1 = scmp.ne.s32.totalorder %s110_s25, %s194_s29  ;;  %p200_p3 = scmp.lt.s32.totalorder %s194_s29, %s194_s29 }
  0x33   :  { %p201_p4 = por %p200_p3, %p199_p2 }
  0x35   :  { %p202_p5 = pnand %p201_p4, %p195_p1 }
  0x37   :  { %205 = shalt.err (!%p202_p5)
}
  0x38   :  { %112 = dma.vmem_to_hbm [thread:$0]  %s110_s25, 128, %s263_s3, [#allocation9]  }
  0x39   :  { %218 = dma.done.wait [#allocation4], 128  }
  0x3a   :  { %219 = vsyncadd [#allocation4], 4294967168 }
  0x3b   :  { %220 = dma.done.wait [#allocation9], 128  }
  0x3c   :  { %221 = vsyncadd [#allocation9], 4294967168 }
  0x3d   :  { %119 = vsyncpa [#allocation3], 1 }
  0x3e   :  { %120 = vsyncpa [#allocation6], 1 }
  0x3f   :  { %121 = vsyncpa [#allocation4], 1 }
  0x40   :  { %122 = vsyncpa [#allocation9], 1 }

</bundles_post_ra>
